<compile_context>
chip_gen: v6e
topology: v6e:2x2x1
jax: 0.10.0
libtpu: 0.0.40
codegen_flags: <defaults>
</compile_context>

<pallas_src>
import functools
import math

import jax
import jax.numpy as jnp
from jax.experimental import pallas as pl
from jax.experimental.pallas import tpu as pltpu

_LANE = 128
_SUBLANE = 8


def _ln_kernel(x_ref, g_ref, b_ref, o_ref, *, eps, n):
    """Plain path: one logical row per physical row (hidden on the lane axis)."""
    x = x_ref[...].astype(jnp.float32)            # (T, H)
    g = g_ref[...].astype(jnp.float32)            # (1, H) — cast once, VMEM-resident
    b = b_ref[...].astype(jnp.float32)
    mean = jnp.sum(x, axis=-1, keepdims=True) * (1.0 / n)
    d = x - mean
    var = jnp.sum(d * d, axis=-1, keepdims=True) * (1.0 / (n - 1))   # unbiased (torch.std)
    # Per-row reciprocal instead of a full-tile divide. approx=False keeps
    # exact f32 results (approx=True would be a free further micro-opt if a
    # looser tolerance is acceptable).
    inv = pl.reciprocal(jnp.sqrt(var) + eps, approx=False)           # (T, 1)
    o_ref[...] = (d * inv * g + b).astype(o_ref.dtype)


def _ln_packed_kernel(x_ref, g_ref, b_ref, o_ref, *, eps, n, pack):
    """Lane-packed path: `pack` logical rows of width n share one physical row
    of width pack*n (== 128), so HBM loads and the output store stay lane-dense.
    Per-segment stats are computed exactly in f32 with static lane slices."""
    x = x_ref[...].astype(jnp.float32)            # (T, pack * n)
    g = g_ref[...].astype(jnp.float32)            # (1, n) — same gamma for every segment
    b = b_ref[...].astype(jnp.float32)
    outs = []
    for s in range(pack):                         # static unroll; pack <= 16
        xs = x[:, s * n:(s + 1) * n]              # (T, n) static lane slice
        mean = jnp.sum(xs, axis=-1, keepdims=True) * (1.0 / n)
        d = xs - mean
        var = jnp.sum(d * d, axis=-1, keepdims=True) * (1.0 / (n - 1))
        inv = pl.reciprocal(jnp.sqrt(var) + eps, approx=False)       # (T, 1) per logical row
        outs.append(d * inv * g + b)
    # Single full-width (lane-dense, unmasked) store.
    o_ref[...] = jnp.concatenate(outs, axis=-1).astype(o_ref.dtype)


def _pick_tile_rows(rows, width, itemsize, budget_bytes, max_tile=2048):
    """Largest row tile whose double-buffered (in + out) tiles fit the budget."""
    per_row = 4 * width * itemsize                # 2 buffers x (input + output)
    cap = min(max(_SUBLANE, budget_bytes // per_row), max_tile)
    if rows <= cap:
        return rows                               # single block (== full dim, always legal)
    t = (cap // _SUBLANE) * _SUBLANE
    while t >= _SUBLANE and rows % t:
        t -= _SUBLANE
    if t >= _SUBLANE:
        return t                                  # sublane-aligned divisor -> no padding
    return (cap // _SUBLANE) * _SUBLANE           # caller pads rows up to a multiple


def layer_norm(x, gamma, beta, *, eps=1e-12, tile_rows=None,
               vmem_budget_bytes=24 << 20):
    """x: (..., hidden); gamma, beta: (hidden,). Returns same shape/dtype as x."""
    orig_shape = x.shape
    hidden = orig_shape[-1]
    rows = math.prod(orig_shape[:-1])
    itemsize = jnp.dtype(x.dtype).itemsize

    # Pack several logical rows per 128-lane slab when hidden is small, so the
    # kernel's loads/stores are lane-dense. Pure reshape: free layout plumbing.
    pack = 1
    if hidden < _LANE and _LANE % hidden == 0 and rows % (_LANE // hidden) == 0:
        pack = _LANE // hidden
    prows = rows // pack
    width = hidden * pack

    xw = x.reshape(prows, width)
    gw = gamma.reshape(1, hidden)
    bw = beta.reshape(1, hidden)

    if tile_rows is None:
        tile_rows = _pick_tile_rows(prows, width, itemsize, int(vmem_budget_bytes))
    # (If tile_rows is passed explicitly it should be a multiple of 8.)
    pad = (-prows) % tile_rows
    if pad:
        # Zero rows normalize to `beta` (finite); they are sliced off below.
        xw = jnp.pad(xw, ((0, pad), (0, 0)))
    grows = prows + pad

    if pack == 1:
        kernel = functools.partial(_ln_kernel, eps=float(eps), n=hidden)
    else:
        kernel = functools.partial(_ln_packed_kernel, eps=float(eps), n=hidden, pack=pack)

    out = pl.pallas_call(
        kernel,
        out_shape=jax.ShapeDtypeStruct((grows, width), x.dtype),
        grid=(grows // tile_rows,),
        in_specs=[
            pl.BlockSpec((tile_rows, width), lambda i: (i, 0)),
            pl.BlockSpec((1, hidden), lambda i: (0, 0)),   # VMEM-resident across grid
            pl.BlockSpec((1, hidden), lambda i: (0, 0)),
        ],
        out_specs=pl.BlockSpec((tile_rows, width), lambda i: (i, 0)),
        compiler_params=pltpu.CompilerParams(
            dimension_semantics=("parallel",),             # megacore / 2-TC sharding on v7x
            vmem_limit_bytes=min(int(vmem_budget_bytes) + (8 << 20), 64 << 20),
        ),
    )(xw, gw, bw)

    if pad:
        out = out[:prows]
    return out.reshape(orig_shape)


def layer_norm_ref(x, gamma, beta, eps=1e-12):
    x32 = x.astype(jnp.float32)
    mean = jnp.mean(x32, axis=-1, keepdims=True)
    var = jnp.sum((x32 - mean) ** 2, axis=-1, keepdims=True) / (x.shape[-1] - 1)
    std = jnp.sqrt(var)
    out = (x32 - mean) / (std + eps)
    return (gamma * out + beta).astype(x.dtype)


if __name__ == "__main__":
    key = jax.random.PRNGKey(0)
    k1, k2, k3, k4 = jax.random.split(key, 4)

    # Config A: the module's toy config (n_heads=4, dim=8 -> hidden=32).
    # hidden < 128 -> exercises the lane-packed path (4 rows per 128-lane slab).
    n_heads, dim = 4, 8
    hidden = n_heads * dim                       # 32
    batch, seq = 2, 8
    x = jax.random.normal(k1, (batch, seq, hidden), dtype=jnp.float32)
    gamma = (jnp.ones((hidden,), jnp.float32)
             + 0.1 * jax.random.normal(k2, (hidden,), jnp.float32))
    beta = 0.1 * jax.random.normal(k3, (hidden,), jnp.float32)

    out = jax.block_until_ready(layer_norm(x, gamma, beta, eps=1e-12))
    ref = layer_norm_ref(x, gamma, beta, eps=1e-12)
    assert out.shape == x.shape
    assert jnp.allclose(out, ref, atol=1e-5, rtol=1e-5), "packed-path mismatch"

    # Config B: hidden a multiple of 128 (n_heads=4, dim=32 -> hidden=128),
    # i.e. the realistic lane-dense layout -> exercises the plain path.
    hidden2 = 4 * 32                             # 128
    x2 = jax.random.normal(k4, (batch, seq, hidden2), dtype=jnp.float32)
    gamma2 = jnp.ones((hidden2,), jnp.float32)
    beta2 = jnp.zeros((hidden2,), jnp.float32)
    out2 = jax.block_until_ready(layer_norm(x2, gamma2, beta2, eps=1e-12))
    ref2 = layer_norm_ref(x2, gamma2, beta2, eps=1e-12)
    assert jnp.allclose(out2, ref2, atol=1e-5, rtol=1e-5), "plain-path mismatch"

    print("KERNEL_OK")
</pallas_src>

<mosaic_0001>
module attributes {stable_mosaic.version = 11 : i64} {
  func.func @_ln_packed_kernel(%arg0: i32, %arg1: memref<4x128xf32, #tpu.memory_space<vmem>>, %arg2: memref<1x32xf32, #tpu.memory_space<vmem>>, %arg3: memref<1x32xf32, #tpu.memory_space<vmem>>, %arg4: memref<4x128xf32, #tpu.memory_space<vmem>>) attributes {dimension_semantics = [#tpu.dimension_semantics<parallel>], iteration_bounds = array<i64: 1>, scalar_prefetch = 0 : i64, scratch_operands = 0 : i64, tpu.core_type = #tpu.core_type<tc>, window_params = [{transform_indices = @transform_0, window_bounds = array<i64: 4, 128>}, {pipeline_mode = #tpu.pipeline_mode<synchronous>, transform_indices = @transform_1, window_bounds = array<i64: 1, 32>}, {pipeline_mode = #tpu.pipeline_mode<synchronous>, transform_indices = @transform_2, window_bounds = array<i64: 1, 32>}, {transform_indices = @transform_3, window_bounds = array<i64: 4, 128>}]} {
    %c0 = arith.constant 0 : index
    %c0_0 = arith.constant 0 : index
    %0 = vector.load %arg1[%c0, %c0_0] : memref<4x128xf32, #tpu.memory_space<vmem>>, vector<4x128xf32>
    %c0_1 = arith.constant 0 : index
    %c0_2 = arith.constant 0 : index
    %1 = vector.load %arg2[%c0_1, %c0_2] : memref<1x32xf32, #tpu.memory_space<vmem>>, vector<1x32xf32>
    %c0_3 = arith.constant 0 : index
    %c0_4 = arith.constant 0 : index
    %2 = vector.load %arg3[%c0_3, %c0_4] : memref<1x32xf32, #tpu.memory_space<vmem>>, vector<1x32xf32>
    %3 = vector.extract_strided_slice %0 {offsets = [0, 0], sizes = [4, 32], strides = [1, 1]} : vector<4x128xf32> to vector<4x32xf32>
    %cst = arith.constant dense<0.000000e+00> : vector<4xf32>
    %4 = vector.multi_reduction <add>, %3, %cst [1] : vector<4x32xf32> to vector<4xf32>
    %5 = vector.shape_cast %4 : vector<4xf32> to vector<4x1xf32>
    %cst_5 = arith.constant 3.125000e-02 : f32
    %6 = vector.broadcast %cst_5 : f32 to vector<4x1xf32>
    %7 = arith.mulf %5, %6 : vector<4x1xf32>
    %8 = vector.broadcast %7 : vector<4x1xf32> to vector<4x32xf32>
    %9 = arith.subf %3, %8 : vector<4x32xf32>
    %10 = arith.mulf %9, %9 : vector<4x32xf32>
    %cst_6 = arith.constant dense<0.000000e+00> : vector<4xf32>
    %11 = vector.multi_reduction <add>, %10, %cst_6 [1] : vector<4x32xf32> to vector<4xf32>
    %12 = vector.shape_cast %11 : vector<4xf32> to vector<4x1xf32>
    %cst_7 = arith.constant 0.0322580636 : f32
    %13 = vector.broadcast %cst_7 : f32 to vector<4x1xf32>
    %14 = arith.mulf %12, %13 : vector<4x1xf32>
    %15 = math.sqrt %14 : vector<4x1xf32>
    %cst_8 = arith.constant 9.99999996E-13 : f32
    %16 = vector.broadcast %cst_8 : f32 to vector<4x1xf32>
    %17 = arith.addf %15, %16 : vector<4x1xf32>
    %18 = tpu.reciprocal %17 : vector<4x1xf32> -> vector<4x1xf32>
    %19 = vector.broadcast %18 : vector<4x1xf32> to vector<4x32xf32>
    %20 = arith.mulf %9, %19 : vector<4x32xf32>
    %21 = vector.broadcast %1 : vector<1x32xf32> to vector<4x32xf32>
    %22 = arith.mulf %20, %21 : vector<4x32xf32>
    %23 = vector.broadcast %2 : vector<1x32xf32> to vector<4x32xf32>
    %24 = arith.addf %22, %23 : vector<4x32xf32>
    %25 = vector.extract_strided_slice %0 {offsets = [0, 32], sizes = [4, 32], strides = [1, 1]} : vector<4x128xf32> to vector<4x32xf32>
    %cst_9 = arith.constant dense<0.000000e+00> : vector<4xf32>
    %26 = vector.multi_reduction <add>, %25, %cst_9 [1] : vector<4x32xf32> to vector<4xf32>
    %27 = vector.shape_cast %26 : vector<4xf32> to vector<4x1xf32>
    %cst_10 = arith.constant 3.125000e-02 : f32
    %28 = vector.broadcast %cst_10 : f32 to vector<4x1xf32>
    %29 = arith.mulf %27, %28 : vector<4x1xf32>
    %30 = vector.broadcast %29 : vector<4x1xf32> to vector<4x32xf32>
    %31 = arith.subf %25, %30 : vector<4x32xf32>
    %32 = arith.mulf %31, %31 : vector<4x32xf32>
    %cst_11 = arith.constant dense<0.000000e+00> : vector<4xf32>
    %33 = vector.multi_reduction <add>, %32, %cst_11 [1] : vector<4x32xf32> to vector<4xf32>
    %34 = vector.shape_cast %33 : vector<4xf32> to vector<4x1xf32>
    %cst_12 = arith.constant 0.0322580636 : f32
    %35 = vector.broadcast %cst_12 : f32 to vector<4x1xf32>
    %36 = arith.mulf %34, %35 : vector<4x1xf32>
    %37 = math.sqrt %36 : vector<4x1xf32>
    %cst_13 = arith.constant 9.99999996E-13 : f32
    %38 = vector.broadcast %cst_13 : f32 to vector<4x1xf32>
    %39 = arith.addf %37, %38 : vector<4x1xf32>
    %40 = tpu.reciprocal %39 : vector<4x1xf32> -> vector<4x1xf32>
    %41 = vector.broadcast %40 : vector<4x1xf32> to vector<4x32xf32>
    %42 = arith.mulf %31, %41 : vector<4x32xf32>
    %43 = vector.broadcast %1 : vector<1x32xf32> to vector<4x32xf32>
    %44 = arith.mulf %42, %43 : vector<4x32xf32>
    %45 = vector.broadcast %2 : vector<1x32xf32> to vector<4x32xf32>
    %46 = arith.addf %44, %45 : vector<4x32xf32>
    %47 = vector.extract_strided_slice %0 {offsets = [0, 64], sizes = [4, 32], strides = [1, 1]} : vector<4x128xf32> to vector<4x32xf32>
    %cst_14 = arith.constant dense<0.000000e+00> : vector<4xf32>
    %48 = vector.multi_reduction <add>, %47, %cst_14 [1] : vector<4x32xf32> to vector<4xf32>
    %49 = vector.shape_cast %48 : vector<4xf32> to vector<4x1xf32>
    %cst_15 = arith.constant 3.125000e-02 : f32
    %50 = vector.broadcast %cst_15 : f32 to vector<4x1xf32>
    %51 = arith.mulf %49, %50 : vector<4x1xf32>
    %52 = vector.broadcast %51 : vector<4x1xf32> to vector<4x32xf32>
    %53 = arith.subf %47, %52 : vector<4x32xf32>
    %54 = arith.mulf %53, %53 : vector<4x32xf32>
    %cst_16 = arith.constant dense<0.000000e+00> : vector<4xf32>
    %55 = vector.multi_reduction <add>, %54, %cst_16 [1] : vector<4x32xf32> to vector<4xf32>
    %56 = vector.shape_cast %55 : vector<4xf32> to vector<4x1xf32>
    %cst_17 = arith.constant 0.0322580636 : f32
    %57 = vector.broadcast %cst_17 : f32 to vector<4x1xf32>
    %58 = arith.mulf %56, %57 : vector<4x1xf32>
    %59 = math.sqrt %58 : vector<4x1xf32>
    %cst_18 = arith.constant 9.99999996E-13 : f32
    %60 = vector.broadcast %cst_18 : f32 to vector<4x1xf32>
    %61 = arith.addf %59, %60 : vector<4x1xf32>
    %62 = tpu.reciprocal %61 : vector<4x1xf32> -> vector<4x1xf32>
    %63 = vector.broadcast %62 : vector<4x1xf32> to vector<4x32xf32>
    %64 = arith.mulf %53, %63 : vector<4x32xf32>
    %65 = vector.broadcast %1 : vector<1x32xf32> to vector<4x32xf32>
    %66 = arith.mulf %64, %65 : vector<4x32xf32>
    %67 = vector.broadcast %2 : vector<1x32xf32> to vector<4x32xf32>
    %68 = arith.addf %66, %67 : vector<4x32xf32>
    %69 = vector.extract_strided_slice %0 {offsets = [0, 96], sizes = [4, 32], strides = [1, 1]} : vector<4x128xf32> to vector<4x32xf32>
    %cst_19 = arith.constant dense<0.000000e+00> : vector<4xf32>
    %70 = vector.multi_reduction <add>, %69, %cst_19 [1] : vector<4x32xf32> to vector<4xf32>
    %71 = vector.shape_cast %70 : vector<4xf32> to vector<4x1xf32>
    %cst_20 = arith.constant 3.125000e-02 : f32
    %72 = vector.broadcast %cst_20 : f32 to vector<4x1xf32>
    %73 = arith.mulf %71, %72 : vector<4x1xf32>
    %74 = vector.broadcast %73 : vector<4x1xf32> to vector<4x32xf32>
    %75 = arith.subf %69, %74 : vector<4x32xf32>
    %76 = arith.mulf %75, %75 : vector<4x32xf32>
    %cst_21 = arith.constant dense<0.000000e+00> : vector<4xf32>
    %77 = vector.multi_reduction <add>, %76, %cst_21 [1] : vector<4x32xf32> to vector<4xf32>
    %78 = vector.shape_cast %77 : vector<4xf32> to vector<4x1xf32>
    %cst_22 = arith.constant 0.0322580636 : f32
    %79 = vector.broadcast %cst_22 : f32 to vector<4x1xf32>
    %80 = arith.mulf %78, %79 : vector<4x1xf32>
    %81 = math.sqrt %80 : vector<4x1xf32>
    %cst_23 = arith.constant 9.99999996E-13 : f32
    %82 = vector.broadcast %cst_23 : f32 to vector<4x1xf32>
    %83 = arith.addf %81, %82 : vector<4x1xf32>
    %84 = tpu.reciprocal %83 : vector<4x1xf32> -> vector<4x1xf32>
    %85 = vector.broadcast %84 : vector<4x1xf32> to vector<4x32xf32>
    %86 = arith.mulf %75, %85 : vector<4x32xf32>
    %87 = vector.broadcast %1 : vector<1x32xf32> to vector<4x32xf32>
    %88 = arith.mulf %86, %87 : vector<4x32xf32>
    %89 = vector.broadcast %2 : vector<1x32xf32> to vector<4x32xf32>
    %90 = arith.addf %88, %89 : vector<4x32xf32>
    %91 = tpu.concatenate %24, %46, %68, %90 in 1 : vector<4x32xf32>, vector<4x32xf32>, vector<4x32xf32>, vector<4x32xf32> -> vector<4x128xf32>
    %c0_24 = arith.constant 0 : index
    %c0_25 = arith.constant 0 : index
    %92 = vector.load %arg4[%c0_24, %c0_25] : memref<4x128xf32, #tpu.memory_space<vmem>>, vector<4x128xf32>
    tpu.vector_store %arg4[%c0_24, %c0_25], %91 {strides = array<i32>} : memref<4x128xf32, #tpu.memory_space<vmem>>, vector<4x128xf32>,
    return
  }
  func.func @transform_0(%arg0: i32) -> (i32, i32) {
    %c0_i32 = arith.constant 0 : i32
    %c0_i32_0 = arith.constant 0 : i32
    return %arg0, %c0_i32 : i32, i32
  }
  func.func @transform_1(%arg0: i32) -> (i32, i32) {
    %c0_i32 = arith.constant 0 : i32
    %c0_i32_0 = arith.constant 0 : i32
    %c0_i32_1 = arith.constant 0 : i32
    return %c0_i32, %c0_i32_0 : i32, i32
  }
  func.func @transform_2(%arg0: i32) -> (i32, i32) {
    %c0_i32 = arith.constant 0 : i32
    %c0_i32_0 = arith.constant 0 : i32
    %c0_i32_1 = arith.constant 0 : i32
    return %c0_i32, %c0_i32_0 : i32, i32
  }
  func.func @transform_3(%arg0: i32) -> (i32, i32) {
    %c0_i32 = arith.constant 0 : i32
    %c0_i32_0 = arith.constant 0 : i32
    return %arg0, %c0_i32 : i32, i32
  }
}

</mosaic_0001>

<bundles_post_ra>
// kernel: tpu_custom_call.1
= control target key start
LH: loop header
LB: loop body
LE: loop exit
PB: predicated region body
PF: predicated region fallthrough
CT: control target
= control target key end

     0   :  { %8 = vsyncpa [#allocation3], 0  ;;  %s349_s0 = inlined_call_operand.hbm [shape: f32[4,128], index: 0, kind: input, shape index: {}]   ;;  %s350_s1 = inlined_call_operand.vmem [shape: f32[1,32], index: 1, kind: input, shape index: {}]   ;;  %s351_s2 = inlined_call_operand.vmem [shape: f32[1,32], index: 2, kind: input, shape index: {}]   ;;  %s352_s3 = inlined_call_operand.hbm [shape: f32[4,128], index: 3, kind: output, shape index: {}]  }
   0x1   :  { %9 = vsyncpa [#allocation4], 0  ;;  %s260_s12 = smov [#allocation2]  }
   0x2   :  { %s16_s13 = sshll.u32 %s260_s12, 4  ;;  %s17_s13 = int_to_ptr.vmem [resolvable:$true] %s16_s13 }
   0x3   :  { %s224_s14 = scalar_lea.vmem %s17_s13, 64  ;;  %p229_p1 = scmp.lt.s32.totalorder %s17_s13, %s17_s13 }
   0x4   :  { %p225_p0 = scmp.ne.s32.totalorder %s17_s13, %s224_s14  ;;  %p230_p2 = scmp.lt.s32.totalorder %s224_s14, %s224_s14 }
   0x6   :  { %p231_p3 = por %p230_p2, %p229_p1 }
   0x8   :  { %p232_p4 = pnand %p231_p3, %p225_p0 }
   0xa   :  { %235 = shalt.err (!%p232_p4)
}
   0xb   :  { %19 = dma.hbm_to_vmem [thread:$0]  %s349_s0, 64, %s17_s13, [#allocation3]  }
   0xc   :  { %256 = dma.done.wait [#allocation3], 64  }
   0xd   :  { %257 = vsyncadd [#allocation3], 4294967232  ;;  %v27_v0 = vld [vmem:[#allocation2] sm:$0xf]  ;;  %s261_s17 = smov 96   ;;  %s262_s18 = smov 32  }
   0xe   :  { %66 = vrot.lane.b32.xlu0 %v27_v0, %s261_s17  ;;  %136 = vrot.lane.b32.xlu1 %v27_v0, %s262_s18  ;;  %s263_s19 = smov 64   ;;  %vm30_vm0 = vcmask 257024   ;;  %v318_v25 = vld [vmem:[%s350_s1] ss:$0 sm:$0xff]  ;;  %vm171_vm9 = vcmask 261120   ;;  %vm173_vm10 = vcmask 523264  }
   0xf   :  { %v31_v3 = vsel %vm30_vm0, %v27_v0, 0.0  ;;  %v327_v26 = vld [vmem:[%s351_s2] ss:$0 sm:$0xff]  ;;  %s264_s1 = smov [#allocation5]   ;;  %vm175_vm11 = vcmask 785408  }
  0x10   :  { %s184_s2 = sshll.u32 %s264_s1, 4  ;;  %s185_s2 = int_to_ptr.vmem [resolvable:$true] %s184_s2 }
  0x11   :  { %s236_s23 = scalar_lea.vmem %s185_s2, 64  ;;  %p241_p6 = scmp.lt.s32.totalorder %s185_s2, %s185_s2 }
  0x12   :  { %101 = vrot.lane.b32.xlu0 %v27_v0, %s263_s19  ;;  %p237_p5 = scmp.ne.s32.totalorder %s185_s2, %s236_s23  ;;  %p242_p7 = scmp.lt.s32.totalorder %s236_s23, %s236_s23 }
  0x14   :  { %p243_p8 = por %p242_p7, %p241_p6 }
  0x16   :  { %p244_p9 = pnand %p243_p8, %p237_p5 }
  0x80   :  { %v67_v1 = vpop.permute.xlu0 %66  ;;  %v137_v5 = vpop.permute.xlu1 %136 }
  0x81   :  { %v69_v2 = vsel %vm30_vm0, %v67_v1, 0.0  ;;  %v139_v7 = vsel %vm30_vm0, %v137_v5, 0.0 }
  0x82   :  { %70 = vadd.xlane.f32.xlu1 %v69_v2 }
  0x84   :  { %v102_v4 = vpop.permute.xlu0 %101 }
  0x85   :  { %v104_v6 = vsel %vm30_vm0, %v102_v4, 0.0 }
  0x86   :  { %105 = vadd.xlane.f32.xlu0 %v104_v6  ;;  %32 = vadd.xlane.f32.xlu1 %v31_v3 }
  0x8a   :  { %140 = vadd.xlane.f32.xlu0 %v139_v7 }
 0x10b   :  { %v71_v8 = vpop.xlane.xlu1 %70 }
 0x10c   :  { %v72_v9 = vmul.f32 0.03125, %v71_v8 }
 0x10e   :  { %v295_v10 = vsub.f32 %v27_v0, %v72_v9 }
 0x10f   :  { %v106_v11 = vpop.xlane.xlu0 %105  ;;  %v33_v20 = vpop.xlane.xlu1 %32 }
 0x110   :  { %v107_v12 = vmul.f32 0.03125, %v106_v11  ;;  %v74_v13 = vmul.f32 %v295_v10, %v295_v10  ;;  %v34_v21 = vmul.f32 0.03125, %v33_v20 }
 0x112   :  { %v299_v14 = vsub.f32 %v27_v0, %v107_v12  ;;  %76 = vrot.lane.b32.xlu0 %v74_v13, %s261_s17  ;;  %v310_v22 = vsub.f32 %v27_v0, %v34_v21 }
 0x113   :  { %v141_v15 = vpop.xlane.xlu0 %140 }
 0x114   :  { %v142_v16 = vmul.f32 0.03125, %v141_v15  ;;  %v109_v17 = vmul.f32 %v299_v14, %v299_v14  ;;  %v36_v23 = vmul.f32 %v310_v22, %v310_v22 }
 0x116   :  { %v304_v18 = vsub.f32 %v27_v0, %v142_v16  ;;  %111 = vrot.lane.b32.xlu1 %v109_v17, %s263_s19  ;;  %v37_v24 = vsel %vm30_vm0, %v36_v23, 0.0 }
 0x118   :  { %v144_v19 = vmul.f32 %v304_v18, %v304_v18 }
 0x11a   :  { %146 = vrot.lane.b32.xlu1 %v144_v19, %s262_s18 }
 0x131   :  { %38 = vadd.xlane.f32.xlu0 %v37_v24 }
 0x147   :  { %93 = vrot.lane.b32.xlu0 %v318_v25, %s262_s18 }
 0x14b   :  { %128 = vrot.lane.b32.xlu0 %v318_v25, %s263_s19 }
 0x14f   :  { %132 = vrot.lane.b32.xlu0 %v327_v26, %s263_s19 }
 0x153   :  { %163 = vrot.lane.b32.xlu0 %v318_v25, %s261_s17 }
 0x184   :  { %v77_v27 = vpop.permute.xlu0 %76 }
 0x185   :  { %v79_v28 = vsel %vm30_vm0, %v77_v27, 0.0 }
 0x186   :  { %80 = vadd.xlane.f32.xlu1 %v79_v28 }
 0x188   :  { %v112_v29 = vpop.permute.xlu1 %111 }
 0x189   :  { %v114_v30 = vsel %vm30_vm0, %v112_v29, 0.0 }
 0x18a   :  { %115 = vadd.xlane.f32.xlu1 %v114_v30 }
 0x18c   :  { %v147_v31 = vpop.permute.xlu1 %146 }
 0x18d   :  { %v149_v32 = vsel %vm30_vm0, %v147_v31, 0.0 }
 0x18e   :  { %150 = vadd.xlane.f32.xlu1 %v149_v32 }
 0x19f   :  { %97 = vrot.lane.b32.xlu1 %v327_v26, %s262_s18 }
 0x1a3   :  { %167 = vrot.lane.b32.xlu1 %v327_v26, %s261_s17 }
 0x1ba   :  { %v39_v33 = vpop.xlane.xlu0 %38 }
 0x1bb   :  { %v40_v34 = vmul.f32 0.032258064, %v39_v33 }
 0x1bd   :  { %200 = vrsqrt.f32 %v40_v34  ;;  %vm43_vm1 = vcmp.eq.f32.partialorder %v40_v34, inf  ;;  %v46_v43 = vand.u32 2147483648, %v40_v34  ;;  %vm45_vm2 = vcmp.eq.f32.partialorder %v40_v34, 0.0 }
 0x1be   :  { %v94_v62 = vpop.permute.xlu0 %93 }
 0x1c2   :  { %v129_v2 = vpop.permute.xlu0 %128 }
 0x1c6   :  { %v133_v6 = vpop.permute.xlu0 %132 }
 0x1ca   :  { %v201_v38 = vpop.eup %200  ;;  %v164_v17 = vpop.permute.xlu0 %163 }
 0x1cb   :  { %v42_v40 = vmul.f32 %v201_v38, %v40_v34 }
 0x1cd   :  { %v44_v44 = vsel %vm43_vm1, %v40_v34, %v42_v40 }
 0x1ce   :  { %v47_v45 = vsel %vm45_vm2, %v46_v43, %v44_v44 }
 0x1cf   :  { %v48_v48 = vadd.f32 1e-12, %v47_v45 }
 0x20f   :  { %v81_v35 = vpop.xlane.xlu1 %80 }
 0x210   :  { %v82_v36 = vmul.f32 0.032258064, %v81_v35 }
 0x212   :  { %202 = vrsqrt.f32 %v82_v36  ;;  %vm85_vm3 = vcmp.eq.f32.partialorder %v82_v36, inf  ;;  %v88_v49 = vand.u32 2147483648, %v82_v36  ;;  %vm87_vm4 = vcmp.eq.f32.partialorder %v82_v36, 0.0 }
 0x213   :  { %v116_v37 = vpop.xlane.xlu1 %115 }
 0x214   :  { %v117_v39 = vmul.f32 0.032258064, %v116_v37 }
 0x216   :  { %204 = vrsqrt.f32 %v117_v39  ;;  %vm120_vm5 = vcmp.eq.f32.partialorder %v117_v39, inf  ;;  %v123_v55 = vand.u32 2147483648, %v117_v39  ;;  %vm122_vm6 = vcmp.eq.f32.partialorder %v117_v39, 0.0 }
 0x217   :  { %v151_v41 = vpop.xlane.xlu1 %150 }
 0x218   :  { %v152_v42 = vmul.f32 0.032258064, %v151_v41 }
 0x21a   :  { %206 = vrsqrt.f32 %v152_v42  ;;  %vm155_vm7 = vcmp.eq.f32.partialorder %v152_v42, inf  ;;  %v158_v61 = vand.u32 2147483648, %v152_v42  ;;  %vm157_vm8 = vcmp.eq.f32.partialorder %v152_v42, 0.0 }
 0x21b   :  { %208 = vrcp.f32 %v48_v48  ;;  %v98_v12 = vpop.permute.xlu1 %97 }
 0x21f   :  { %v203_v46 = vpop.eup %202  ;;  %v168_v23 = vpop.permute.xlu1 %167 }
 0x220   :  { %v84_v47 = vmul.f32 %v203_v46, %v82_v36 }
 0x222   :  { %v86_v50 = vsel %vm85_vm3, %v82_v36, %v84_v47 }
 0x223   :  { %v205_v51 = vpop.eup %204  ;;  %v89_v52 = vsel %vm87_vm4, %v88_v49, %v86_v50 }
 0x224   :  { %v119_v53 = vmul.f32 %v205_v51, %v117_v39  ;;  %v90_v54 = vadd.f32 1e-12, %v89_v52 }
 0x226   :  { %v121_v56 = vsel %vm120_vm5, %v117_v39, %v119_v53  ;;  %210 = vrcp.f32 %v90_v54 }
 0x227   :  { %v207_v57 = vpop.eup %206  ;;  %v124_v58 = vsel %vm122_vm6, %v123_v55, %v121_v56 }
 0x228   :  { %v154_v59 = vmul.f32 %v207_v57, %v152_v42  ;;  %v125_v60 = vadd.f32 1e-12, %v124_v58  ;;  %v209_v3 = vpop.eup %208 }
 0x229   :  { %v50_v7 = vmul.f32 %v209_v3, %v310_v22 }
 0x22a   :  { %v156_v63 = vsel %vm155_vm7, %v152_v42, %v154_v59  ;;  %212 = vrcp.f32 %v125_v60 }
 0x22b   :  { %v159_v0 = vsel %vm157_vm8, %v158_v61, %v156_v63  ;;  %v57_v13 = vmul.f32 %v318_v25, %v50_v7 }
 0x22c   :  { %v160_v1 = vadd.f32 1e-12, %v159_v0 }
 0x22e   :  { %214 = vrcp.f32 %v160_v1 }
 0x233   :  { %v211_v4 = vpop.eup %210 }
 0x234   :  { %v92_v5 = vmul.f32 %v211_v4, %v295_v10  ;;  %v64_v10 = vadd.f32 %v327_v26, %v57_v13 }
 0x236   :  { %v96_v9 = vmul.f32 %v94_v62, %v92_v5 }
 0x237   :  { %v213_v8 = vpop.eup %212 }
 0x238   :  { %v127_v11 = vmul.f32 %v213_v8, %v299_v14  ;;  %v100_v19 = vadd.f32 %v98_v12, %v96_v9 }
 0x23a   :  { %v131_v15 = vmul.f32 %v129_v2, %v127_v11  ;;  %v172_v14 = vsel %vm171_vm9, %v64_v10, %v100_v19 }
 0x23b   :  { %v215_v16 = vpop.eup %214 }
 0x23c   :  { %v162_v20 = vmul.f32 %v215_v16, %v304_v18  ;;  %v135_v21 = vadd.f32 %v133_v6, %v131_v15 }
 0x23e   :  { %v166_v24 = vmul.f32 %v164_v17, %v162_v20  ;;  %v174_v27 = vsel %vm173_vm10, %v172_v14, %v135_v21 }
 0x240   :  { %v170_v22 = vadd.f32 %v168_v23, %v166_v24 }
 0x242   :  { %v176_v25 = vsel %vm175_vm11, %v174_v27, %v170_v22 }
 0x243   :  { %177 = vst [vmem:[#allocation5] sm:$0xf] %v176_v25 }
 0x244   :  { %247 = shalt.err (!%p244_p9)
}
 0x245   :  { %187 = dma.vmem_to_hbm [thread:$0]  %s185_s2, 64, %s352_s3, [#allocation4]  }
 0x246   :  { %258 = dma.done.wait [#allocation4], 64  }
 0x247   :  { %259 = vsyncadd [#allocation4], 4294967232 }
 0x248   :  { %191 = vsyncpa [#allocation3], 1 }
 0x249   :  { %192 = vsyncpa [#allocation4], 1 }

</bundles_post_ra>
